<compile_context>
chip_gen: v7x
topology: tpu7x:2x2x1
jax: 0.10.0
libtpu: 0.0.40
codegen_flags: <defaults>
</compile_context>

<pallas_src>
import math

import jax
import jax.numpy as jnp
from jax.experimental import pallas as pl
from jax.experimental.pallas import tpu as pltpu


def _mhkg_kernel(a_ref, u_ref, x_ref, w_ref, f_ref, b_ref, o_ref):
    n = u_ref.shape[0]

    # x @ W  -> [N, Fp], f32 accumulate on the MXU.
    xw = jnp.dot(x_ref[...], w_ref[...], preferred_element_type=jnp.float32)

    # Both spectral branches in one matmul: [2N, N] @ [N, Fp] -> [2N, Fp].
    z = jnp.dot(a_ref[...], xw.astype(a_ref.dtype),
                preferred_element_type=jnp.float32)

    # Per-node learned filters (f32 on the VPU), stacked [2N, 1] broadcast.
    z = z * f_ref[...]

    # Sum the low-pass / high-pass halves, then a single U matmul.
    y = z[:n, :] + z[n:, :]
    out = jnp.dot(u_ref[...], y.astype(u_ref.dtype),
                  preferred_element_type=jnp.float32)

    # Bias add in f32, broadcast over nodes.
    o_ref[...] = (out + b_ref[...]).astype(o_ref.dtype)


def g_mhkg_conv(eigen_vectors, lp, hp, x, W, filter_1, filter_2, bias,
                *, use_bf16_matmul=False):
    """Pallas implementation of G_MHKGConv.forward (same math up to fp
    reassociation as the PyTorch module)."""
    N, f_in = x.shape
    f_out = W.shape[1]

    # Lane-pad the output feature dim to a multiple of 128 for dense stores.
    LANE = 128
    f_pad = pl.cdiv(f_out, LANE) * LANE

    # Precompute the spectral operators (these are constants of the layer /
    # graph in real use): A_lp = lp @ U.T, A_hp = hp @ U.T, stacked [2N, N].
    u_t = eigen_vectors.T
    A = jnp.concatenate([lp @ u_t, hp @ u_t], axis=0)
    filt = jnp.concatenate([filter_1, filter_2], axis=0).astype(jnp.float32)

    W_pad = jnp.zeros((f_in, f_pad), jnp.float32).at[:, :f_out].set(
        W.astype(jnp.float32))
    b_pad = jnp.zeros((1, f_pad), jnp.float32).at[0, :f_out].set(
        bias.astype(jnp.float32))

    # Optional bf16 operands for the MXU (f32 accumulation kept in-kernel).
    mm_dtype = jnp.bfloat16 if use_bf16_matmul else jnp.float32
    a_in = A.astype(mm_dtype)
    u_in = eigen_vectors.astype(mm_dtype)
    x_in = x.astype(mm_dtype)
    w_in = W_pad.astype(mm_dtype)

    vmem = pl.BlockSpec(memory_space=pltpu.MemorySpace.VMEM)

    out = pl.pallas_call(
        _mhkg_kernel,
        out_shape=jax.ShapeDtypeStruct((N, f_pad), jnp.float32),
        in_specs=[vmem, vmem, vmem, vmem, vmem, vmem],
        out_specs=vmem,
    )(a_in, u_in, x_in, w_in, filt, b_pad)

    return out[:, :f_out]


def _reference(eigen_vectors, lp, hp, x, W, filter_1, filter_2, bias):
    x = x @ W
    x_1 = lp @ eigen_vectors.T @ x
    x_1 = x_1 * filter_1
    x_1 = eigen_vectors @ x_1
    x_2 = hp @ eigen_vectors.T @ x
    x_2 = x_2 * filter_2
    x_2 = eigen_vectors @ x_2
    return x_1 + x_2 + bias


if __name__ == "__main__":
    # Small deterministic problem: num_nodes=16, in_features=8, out_features=32
    num_nodes, in_features, out_features = 16, 8, 32
    key = jax.random.PRNGKey(0)
    k_u, k_lp, k_hp, k_x, k_w, k_f1, k_f2 = jax.random.split(key, 7)

    # Inputs: orthonormal eigen-vector basis of a random symmetric matrix.
    sym = jax.random.normal(k_u, (num_nodes, num_nodes), jnp.float32)
    sym = 0.5 * (sym + sym.T)
    _, eigen_vectors = jnp.linalg.eigh(sym)
    lp = jax.random.normal(k_lp, (num_nodes, num_nodes), jnp.float32) * 0.1
    hp = jax.random.normal(k_hp, (num_nodes, num_nodes), jnp.float32) * 0.1
    x = jax.random.normal(k_x, (num_nodes, in_features), jnp.float32)

    # Parameters (deterministic init, mirroring reset_parameters).
    limit = math.sqrt(6.0 / (in_features + out_features))     # xavier_uniform
    W = jax.random.uniform(k_w, (in_features, out_features), jnp.float32,
                           minval=-limit, maxval=limit)
    filter_1 = jax.random.uniform(k_f1, (num_nodes, 1), jnp.float32,
                                  minval=0.9, maxval=1.1)
    filter_2 = jax.random.uniform(k_f2, (num_nodes, 1), jnp.float32,
                                  minval=0.6, maxval=0.8)
    bias = jnp.zeros((out_features,), jnp.float32)

    ref = _reference(eigen_vectors, lp, hp, x, W, filter_1, filter_2, bias)

    # f32 path: reference-accurate.
    out = g_mhkg_conv(eigen_vectors, lp, hp, x, W, filter_1, filter_2, bias)
    out = jax.block_until_ready(out)
    assert out.shape == (num_nodes, out_features)
    assert jnp.allclose(out, ref, atol=1e-4, rtol=1e-4), "f32 mismatch"

    # bf16-operand path (v6e/v7x MXU fast path): looser tolerance.
    out_bf16 = g_mhkg_conv(eigen_vectors, lp, hp, x, W, filter_1, filter_2,
                           bias, use_bf16_matmul=True)
    out_bf16 = jax.block_until_ready(out_bf16)
    assert jnp.allclose(out_bf16, ref, atol=5e-2, rtol=5e-2), "bf16 mismatch"

    print("KERNEL_OK")
</pallas_src>

<mosaic_0001>
module attributes {stable_mosaic.version = 11 : i64} {
  func.func @_mhkg_kernel(%arg0: memref<32x16xf32, #tpu.memory_space<vmem>>, %arg1: memref<16x16xf32, #tpu.memory_space<vmem>>, %arg2: memref<16x8xf32, #tpu.memory_space<vmem>>, %arg3: memref<8x128xf32, #tpu.memory_space<vmem>>, %arg4: memref<32x1xf32, #tpu.memory_space<vmem>>, %arg5: memref<1x128xf32, #tpu.memory_space<vmem>>, %arg6: memref<16x128xf32, #tpu.memory_space<vmem>>) attributes {dimension_semantics = [], scalar_prefetch = 0 : i64, scratch_operands = 0 : i64, tpu.core_type = #tpu.core_type<tc>} {
    %c0 = arith.constant 0 : index
    %c0_0 = arith.constant 0 : index
    %0 = vector.load %arg2[%c0, %c0_0] : memref<16x8xf32, #tpu.memory_space<vmem>>, vector<16x8xf32>
    %c0_1 = arith.constant 0 : index
    %c0_2 = arith.constant 0 : index
    %1 = vector.load %arg3[%c0_1, %c0_2] : memref<8x128xf32, #tpu.memory_space<vmem>>, vector<8x128xf32>
    %cst = arith.constant dense<0.000000e+00> : vector<16x128xf32>
    %2 = tpu.matmul %0, %1, %cst {dimension_numbers = #tpu.dot_dimension_numbers<[1], [0], [0], [1], [0, 0, 1, 1], [], []>} : vector<16x8xf32>, vector<8x128xf32>, vector<16x128xf32> -> vector<16x128xf32>
    %c0_3 = arith.constant 0 : index
    %c0_4 = arith.constant 0 : index
    %3 = vector.load %arg0[%c0_3, %c0_4] : memref<32x16xf32, #tpu.memory_space<vmem>>, vector<32x16xf32>
    %cst_5 = arith.constant dense<0.000000e+00> : vector<32x128xf32>
    %4 = tpu.matmul %3, %2, %cst_5 {dimension_numbers = #tpu.dot_dimension_numbers<[1], [0], [0], [1], [0, 0, 1, 1], [], []>} : vector<32x16xf32>, vector<16x128xf32>, vector<32x128xf32> -> vector<32x128xf32>
    %c0_6 = arith.constant 0 : index
    %c0_7 = arith.constant 0 : index
    %5 = vector.load %arg4[%c0_6, %c0_7] : memref<32x1xf32, #tpu.memory_space<vmem>>, vector<32x1xf32>
    %6 = vector.broadcast %5 : vector<32x1xf32> to vector<32x128xf32>
    %7 = arith.mulf %4, %6 : vector<32x128xf32>
    %8 = vector.extract_strided_slice %7 {offsets = [0, 0], sizes = [16, 128], strides = [1, 1]} : vector<32x128xf32> to vector<16x128xf32>
    %9 = vector.extract_strided_slice %7 {offsets = [16, 0], sizes = [16, 128], strides = [1, 1]} : vector<32x128xf32> to vector<16x128xf32>
    %10 = arith.addf %8, %9 : vector<16x128xf32>
    %c0_8 = arith.constant 0 : index
    %c0_9 = arith.constant 0 : index
    %11 = vector.load %arg1[%c0_8, %c0_9] : memref<16x16xf32, #tpu.memory_space<vmem>>, vector<16x16xf32>
    %cst_10 = arith.constant dense<0.000000e+00> : vector<16x128xf32>
    %12 = tpu.matmul %11, %10, %cst_10 {dimension_numbers = #tpu.dot_dimension_numbers<[1], [0], [0], [1], [0, 0, 1, 1], [], []>} : vector<16x16xf32>, vector<16x128xf32>, vector<16x128xf32> -> vector<16x128xf32>
    %c0_11 = arith.constant 0 : index
    %c0_12 = arith.constant 0 : index
    %13 = vector.load %arg5[%c0_11, %c0_12] : memref<1x128xf32, #tpu.memory_space<vmem>>, vector<1x128xf32>
    %14 = vector.broadcast %13 : vector<1x128xf32> to vector<16x128xf32>
    %15 = arith.addf %12, %14 : vector<16x128xf32>
    %c0_13 = arith.constant 0 : index
    %c0_14 = arith.constant 0 : index
    %16 = vector.load %arg6[%c0_13, %c0_14] : memref<16x128xf32, #tpu.memory_space<vmem>>, vector<16x128xf32>
    tpu.vector_store %arg6[%c0_13, %c0_14], %15 {strides = array<i32>} : memref<16x128xf32, #tpu.memory_space<vmem>>, vector<16x128xf32>,
    return
  }
}

</mosaic_0001>

<bundles_post_ra>
// kernel: tpu_custom_call.1
= control target key start
LH: loop header
LB: loop body
LE: loop exit
PB: predicated region body
PF: predicated region fallthrough
CT: control target
= control target key end

     0   :  { %vm27_vm0 = vcmask 64512   ;;  %s530_s0 = inlined_call_operand.vmem [shape: f32[32,16], index: 0, kind: input, shape index: {}]   ;;  %s531_s1 = inlined_call_operand.vmem [shape: f32[16,16], index: 1, kind: input, shape index: {}]   ;;  %s532_s2 = inlined_call_operand.vmem [shape: f32[16,8], index: 2, kind: input, shape index: {}]   ;;  %s533_s3 = inlined_call_operand.vmem [shape: f32[8,128], index: 3, kind: input, shape index: {}]   ;;  %s534_s4 = inlined_call_operand.vmem [shape: f32[32,1], index: 4, kind: input, shape index: {}]   ;;  %s535_s5 = inlined_call_operand.vmem [shape: f32[1,128], index: 5, kind: input, shape index: {}]   ;;  %s536_s6 = inlined_call_operand.hbm [shape: f32[16,128], index: 6, kind: output, shape index: {}]  }
   0x1   :  { %v26_v0 = vld [vmem:[%s533_s3] sm:$0xff]  ;;  %v25_v2 = vld [vmem:[%s532_s2 + $0x8] sm:$0xff] }
   0x2   :  { %v24_v1 = vld [vmem:[%s532_s2] sm:$0xff]  ;;  %371 = vmatprep.subr.mxu0 %v26_v0 }
   0x3   :  { %373 = vmatprep.mubr.msk.f32.mxu0 %vm27_vm0, %v24_v1 }
   0x4   :  { %11 = vsyncpa [#allocation3], 0  ;;  %372 = vmatpush3.msra.mxu0 %v26_v0  ;;  %v109_v3 = vld [vmem:[%s530_s0] sm:$0xff]  ;;  %vm113_vm1 = vcmask 130048   ;;  %v213_v5 = vld [vmem:[%s534_s4 + $0x10] sm:$0xff]  ;;  %v431_v6 = vmov 0  }
   0x5   :  { %374 = vmatmul.mubr.msk.f32.vlgmr.msra.gmra.mrb[0].mxu0 %vm27_vm0, %v25_v2  ;;  %380 = vmatprep.mubr.msk.f32.mxu1 %vm113_vm1, %v109_v3  ;;  %v211_v4 = vld [vmem:[%s534_s4] sm:$0xff]  ;;  %v212_v7 = vld [vmem:[%s534_s4 + $0x8] sm:$0xff]  ;;  %v214_v8 = vld [vmem:[%s534_s4 + $0x18] sm:$0xff]  ;;  %s432_s21 = smov [#allocation2]  }
   0x6   :  { %405 = vset.pattern.permute.xlu0 %v431_v6  ;;  %406 = vset.pattern.permute.xlu1 %v431_v6  ;;  %v110_v12 = vld [vmem:[%s530_s0 + $0x8] sm:$0xff]  ;;  %v111_v13 = vld [vmem:[%s530_s0 + $0x10] sm:$0xff]  ;;  %v112_v14 = vld [vmem:[%s530_s0 + $0x18] sm:$0xff]  ;;  %s338_s22 = sshll.u32 %s432_s21, 4  ;;  %s339_s22 = int_to_ptr.vmem [resolvable:$true] %s338_s22 }
   0x7   :  { %217 = vperm.xlu0 %405, %v211_v4   ;;  %227 = vperm.xlu1 %406, %v213_v5   ;;  %v241_v15 = vld [vmem:[%s531_s1] sm:$0xff]  ;;  %v242_v31 = vld [vmem:[%s531_s1 + $0x8] sm:$0xff]  ;;  %s407_s23 = scalar_lea.vmem %s339_s22, 256  ;;  %p412_p1 = scmp.lt.s32.totalorder %s339_s22, %s339_s22 }
   0x8   :  { %390 = vmatprep.mubr.msk.f32.mxu0 %vm113_vm1, %v241_v15  ;;  %v355_v32 = vld [vmem:[%s535_s5] ss:$0 sm:$0xff]  ;;  %p408_p0 = scmp.ne.s32.totalorder %s339_s22, %s407_s23  ;;  %p413_p2 = scmp.lt.s32.totalorder %s407_s23, %s407_s23 }
   0xa   :  { %p414_p3 = por %p413_p2, %p412_p1 }
   0xb   :  { %222 = vperm.xlu0 %405, %v212_v7   ;;  %232 = vperm.xlu1 %406, %v214_v8  }
   0xc   :  { %p415_p4 = pnand %p414_p3, %p408_p0 }
  0x86   :  { %v218_v16 = vpop.permute.xlu0 %217  ;;  %v228_v17 = vpop.permute.xlu1 %227 }
  0x8a   :  { %v223_v20 = vpop.permute.xlu0 %222  ;;  %v233_v21 = vpop.permute.xlu1 %232 }
  0xd8   :  { %v375_v9 = vpop.f32.mrb[0].mxu0 }
  0xd9   :  { %v100_v10 = vpop.f32.mrb[1].mxu0 }
  0xda   :  { %v393_v11 = vpack.c.bf16 %v375_v9, %v100_v10 }
  0xdc   :  { %394 = vmatprep.subr.bf16.mxu1 %v393_v11 }
  0xdd   :  { %396 = vmatpush3.bf16.msra.mxu1 %v393_v11 }
  0xe0   :  { %381 = vmatmul.mubr.msk.f32.vlgmr.msra.gmra.mrb[0].mxu1 %vm113_vm1, %v110_v12 }
  0xe1   :  { %383 = vmatprep.mubr.msk.f32.mxu1 %vm113_vm1, %v111_v13 }
  0xe4   :  { %384 = vmatmul.mubr.msk.f32.gmra.mrb[2].mxu1 %vm113_vm1, %v112_v14 }
 0x1b3   :  { %v382_v18 = vpop.f32.mrb[0].mxu1 }
 0x1b4   :  { %v192_v19 = vpop.f32.mrb[1].mxu1  ;;  %v236_v23 = vmul.f32 %v382_v18, %v223_v20 }
 0x1b5   :  { %v235_v26 = vmul.f32 %v218_v16, %v192_v19 }
 0x1b7   :  { %v385_v22 = vpop.f32.mrb[2].mxu1 }
 0x1b8   :  { %v238_v24 = vmul.f32 %v385_v22, %v233_v21  ;;  %v202_v25 = vpop.f32.mrb[3].mxu1 }
 0x1b9   :  { %v237_v27 = vmul.f32 %v228_v17, %v202_v25 }
 0x1ba   :  { %v240_v28 = vadd.f32 %v238_v24, %v236_v23 }
 0x1bb   :  { %v239_v29 = vadd.f32 %v237_v27, %v235_v26 }
 0x1bd   :  { %v397_v30 = vpack.c.bf16 %v240_v28, %v239_v29 }
 0x1bf   :  { %398 = vmatprep.subr.bf16.mxu0 %v397_v30 }
 0x1c0   :  { %400 = vmatpush3.bf16.msra.mxu0 %v397_v30 }
 0x1c3   :  { %391 = vmatmul.mubr.msk.f32.vlgmr.msra.gmra.mrb[2].mxu0 %vm113_vm1, %v242_v31 }
 0x296   :  { %v392_v33 = vpop.f32.mrb[2].mxu0 }
 0x297   :  { %v328_v34 = vadd.f32 %v392_v33, %v355_v32  ;;  %v322_v35 = vpop.f32.mrb[3].mxu0 }
 0x298   :  { %v323_v36 = vadd.f32 %v355_v32, %v322_v35 }
 0x299   :  { %332 = vst [vmem:[#allocation2 + $0x8] sm:$0xff] %v328_v34 }
 0x29a   :  { %331 = vst [vmem:[#allocation2] sm:$0xff] %v323_v36 }
 0x29b   :  { %418 = shalt.err (!%p415_p4)
}
 0x29c   :  { %s419_s5 = scalar_lea.hbm %s536_s6, 256 }
 0x29d   :  { %p420_p5 = scmp.ne.s32.totalorder %s536_s6, %s419_s5  ;;  %p423_p6 = scmp.lt.u32.totalorder %s419_s5, %s536_s6 }
 0x29f   :  { %p425_p7 = pnand %p423_p6, %p420_p5 }
 0x2a1   :  { %428 = shalt.err (!%p425_p7)
}
 0x2a2   :  { %s433_s3 = smov 128   ;;  %s434_s29 = smov 8  }
 0x2a3   :  { %344 = dma.vmem_to_hbm [thread:$0]  %s339_s22, 256, %s536_s6, [#allocation3], %s433_s3, %s433_s3, %s434_s29  }
 0x2a4   :  { %429 = dma.done.wait [#allocation3], 256  }
 0x2a5   :  { %430 = vsyncadd [#allocation3], 4294967040 }
 0x2a6   :  { %348 = vsyncpa [#allocation3], 1 }

</bundles_post_ra>
